<compile_context>
chip_gen: v6e
topology: v6e:2x2x1
jax: 0.10.0
libtpu: 0.0.40
codegen_flags: <defaults>
</compile_context>

<pallas_src>
import functools

import jax
import jax.numpy as jnp
from jax.experimental import pallas as pl
from jax.experimental.pallas import tpu as pltpu


# ---------------------------------------------------------------------------
# Trace-time tile planning (pure Python on static shapes).
# ---------------------------------------------------------------------------

_TARGET_BLOCK_BYTES = 2 << 20   # ~2 MiB input block per grid step
_MAX_BLOCK_BYTES = 8 << 20      # hard cap before routing to the fallback


def _largest_divisor(n, cap, multiple_of=1):
    """Largest divisor d of n with d <= cap and d % multiple_of == 0 (0 if none)."""
    best = 0
    for d in range(1, min(n, cap) + 1):
        if n % d == 0 and d % multiple_of == 0:
            best = d
    return best


def _plan_fast(shape, dtype, scale):
    """Row-tile size tr for the fast path (None => use the fallback)."""
    n, c, h, w = shape
    ho = h // scale
    r_total = c * ho
    itemsize = jnp.dtype(dtype).itemsize
    row_bytes = scale * w * itemsize
    cap = max(1, _TARGET_BLOCK_BYTES // row_bytes)
    tr = _largest_divisor(r_total, cap, multiple_of=8)   # sublane-friendly
    if tr == 0:
        # No multiple-of-8 divisor under the target; taking the full extent is
        # still legal (BlockSpec dim == full array dim) if it fits in VMEM.
        if r_total * row_bytes <= _MAX_BLOCK_BYTES:
            tr = r_total
        else:
            return None
    return tr


def _plan_fallback(shape, dtype, scale):
    """Row-tile size th for the NHWC fallback (always feasible, th >= 1)."""
    n, c, h, w = shape
    ho, wo = h // scale, w // scale
    itemsize = jnp.dtype(dtype).itemsize
    row_bytes = scale * wo * scale * c * itemsize
    cap = max(1, _TARGET_BLOCK_BYTES // row_bytes)
    return _largest_divisor(ho, cap) or 1


# ---------------------------------------------------------------------------
# Fast path: native NCHW, zero wrapper transposes, 1 read + 1 write of HBM.
# ---------------------------------------------------------------------------

def _down_block_kernel_fast(x_ref, o_ref, xt_ref, *, scale, w, wo):
    # x_ref : (1, tr, scale*W)       rows of the (N, C*Ho, scale*W) input view;
    #                                lane slice sh*W:(sh+1)*W is row phase sh.
    # o_ref : (1, scale*scale, tr, Wo) block of the (N, s*s, C*Ho, Wo) out view.
    # xt_ref: (W, tr) VMEM scratch   (W on sublanes) so the stride-s lane
    #                                de-interleave becomes sublane-strided loads.
    for sh in range(scale):
        rows = x_ref[0, :, sh * w:(sh + 1) * w]               # (tr, W)
        xt_ref[...] = jnp.transpose(rows, (1, 0))             # (W, tr)
        for sw in range(scale):
            cols = xt_ref[pl.ds(sw, wo, stride=scale), :]     # (Wo, tr)
            # Lane-dense (tr, Wo) store: Wo is the natural NCHW lane axis.
            o_ref[0, sh * scale + sw, :, :] = jnp.transpose(cols, (1, 0))


@functools.partial(jax.jit, static_argnames=("scale", "tr"))
def _down_block_fast(x_nchw, scale, tr):
    n, c, h, w = x_nchw.shape
    ho, wo = h // scale, w // scale
    r_total = c * ho
    itemsize = jnp.dtype(x_nchw.dtype).itemsize

    # Free (contiguous) views -- no HBM movement outside the kernel.
    x_view = x_nchw.reshape(n, r_total, scale * w)
    out_view_shape = (n, scale * scale, r_total, wo)

    blk_bytes = tr * scale * w * itemsize                 # in block == out block
    scratch_bytes = (-(-w // 8) * 8) * (-(-tr // 128) * 128) * itemsize
    vmem_limit = int(min(100 << 20,
                         max(32 << 20, 4 * blk_bytes + scratch_bytes + (4 << 20))))

    total_bytes = n * c * h * w * itemsize
    kernel = functools.partial(_down_block_kernel_fast, scale=scale, w=w, wo=wo)
    out5 = pl.pallas_call(
        kernel,
        out_shape=jax.ShapeDtypeStruct(out_view_shape, x_nchw.dtype),
        grid=(n, r_total // tr),
        in_specs=[pl.BlockSpec((1, tr, scale * w), lambda b, r: (b, r, 0))],
        out_specs=pl.BlockSpec((1, scale * scale, tr, wo),
                               lambda b, r: (b, 0, r, 0)),
        scratch_shapes=[pltpu.VMEM((w, tr), x_nchw.dtype)],
        compiler_params=pltpu.CompilerParams(
            dimension_semantics=("parallel", "parallel"),
            vmem_limit_bytes=vmem_limit),
        cost_estimate=pl.CostEstimate(flops=0, transcendentals=0,
                                      bytes_accessed=2 * total_bytes),
    )(x_view)

    # Free view back to NCHW: channel k = (sh*scale + sw)*C + ci.
    return out5.reshape(n, scale * scale * c, ho, wo)


# ---------------------------------------------------------------------------
# Fallback path: verified NHWC-layout kernel (one XLA transpose per side).
# ---------------------------------------------------------------------------

def _down_block_kernel_nhwc(x_ref, o_ref, *, scale, sC):
    # x_ref: (1, th, scale, Wo, scale*C)   o_ref: (1, th, Wo, scale*scale*C)
    for sh in range(scale):
        o_ref[0, :, :, sh * sC:(sh + 1) * sC] = x_ref[0, :, sh, :, :]


@functools.partial(jax.jit, static_argnames=("scale", "th"))
def _down_block_fallback(x_nchw, scale, th):
    n, c, h, w = x_nchw.shape
    ho, wo = h // scale, w // scale
    sC, ssC = scale * c, scale * scale * c
    itemsize = jnp.dtype(x_nchw.dtype).itemsize

    # NCHW -> NHWC (one XLA pass), then free view folding (sw, C) into lanes.
    x_k = jnp.transpose(x_nchw, (0, 2, 3, 1)).reshape(n, ho, scale, wo, sC)

    blk_bytes = th * scale * wo * sC * itemsize
    vmem_limit = int(min(100 << 20, max(32 << 20, 4 * blk_bytes + (4 << 20))))

    total_bytes = n * c * h * w * itemsize
    kernel = functools.partial(_down_block_kernel_nhwc, scale=scale, sC=sC)
    out_nhwc = pl.pallas_call(
        kernel,
        out_shape=jax.ShapeDtypeStruct((n, ho, wo, ssC), x_nchw.dtype),
        grid=(n, ho // th),
        in_specs=[pl.BlockSpec((1, th, scale, wo, sC),
                               lambda b, hi: (b, hi, 0, 0, 0))],
        out_specs=pl.BlockSpec((1, th, wo, ssC), lambda b, hi: (b, hi, 0, 0)),
        compiler_params=pltpu.CompilerParams(
            dimension_semantics=("parallel", "parallel"),
            vmem_limit_bytes=vmem_limit),
        cost_estimate=pl.CostEstimate(flops=0, transcendentals=0,
                                      bytes_accessed=2 * total_bytes),
    )(x_k)

    # NHWC -> NCHW (one XLA pass).
    return jnp.transpose(out_nhwc, (0, 3, 1, 2))


# ---------------------------------------------------------------------------
# Public entry point + one-time capability probe.
# ---------------------------------------------------------------------------

def _reference(x, s):
    # Pure-JAX mirror of the exact torch code (view/permute/view).
    n, c, h, w = x.shape
    xr = x.reshape(n, c, h // s, s, w // s, s)
    xr = jnp.transpose(xr, (0, 3, 5, 1, 2, 4))
    return xr.reshape(n, c * s * s, h // s, w // s)


@functools.lru_cache(maxsize=None)
def _fast_path_ok(scale, dtype_name):
    """Probe: the zero-extra-pass kernel relies on in-kernel 2-D transposes and
    sublane-strided pl.ds loads.  Verify (ragged + lane-aligned shapes) that
    this lowers and is bit-exact; otherwise use the verified fallback."""
    dtype = jnp.dtype(dtype_name)
    try:
        for shape in ((2, 3, 4 * scale, 5 * scale),
                      (1, 2, 8 * scale, 128 * scale)):
            x = jax.random.normal(jax.random.PRNGKey(1), shape,
                                  dtype=jnp.float32).astype(dtype)
            tr = _plan_fast(shape, dtype, scale)
            if tr is None:
                return False
            got = jax.block_until_ready(_down_block_fast(x, scale, tr))
            if not bool(jnp.array_equal(got, _reference(x, scale))):
                return False
        return True
    except Exception:
        return False


def down_block(x_nchw, scale):
    """DownBlock forward (NCHW -> NCHW space-to-depth), matching the PyTorch module."""
    n, c, h, w = x_nchw.shape
    if h % scale or w % scale:
        raise ValueError(f"H={h}, W={w} must be divisible by scale={scale}")
    if scale == 1:
        return x_nchw
    tr = _plan_fast(x_nchw.shape, x_nchw.dtype, scale)
    if tr is not None and _fast_path_ok(scale, jnp.dtype(x_nchw.dtype).name):
        return _down_block_fast(x_nchw, scale, tr)
    # TODO(synk): drop the fallback once strided-load/transpose lowering is
    # guaranteed on all deployed jax/libtpu toolchains.
    th = _plan_fallback(x_nchw.shape, x_nchw.dtype, scale)
    return _down_block_fallback(x_nchw, scale, th)


if __name__ == "__main__":
    key = jax.random.PRNGKey(0)
    scale = 2
    x = jax.random.normal(key, (2, 4, 16, 16), dtype=jnp.float32)  # NCHW

    out = jax.block_until_ready(down_block(x, scale))
    ref = _reference(x, scale)

    assert out.shape == (2, 4 * scale * scale, 8, 8), out.shape
    assert jnp.array_equal(out, ref), "Pallas DownBlock output != reference"
    print("KERNEL_OK")
</pallas_src>

<mosaic_0001>
module attributes {stable_mosaic.version = 11 : i64} {
  func.func @_down_block_kernel_fast(%arg0: i32, %arg1: i32, %arg2: memref<1x12x20xf32, #tpu.memory_space<vmem>>, %arg3: memref<1x4x12x5xf32, #tpu.memory_space<vmem>>, %arg4: memref<10x12xf32, #tpu.memory_space<vmem>>) attributes {dimension_semantics = [#tpu.dimension_semantics<parallel>, #tpu.dimension_semantics<parallel>], iteration_bounds = array<i64: 2, 1>, scalar_prefetch = 0 : i64, scratch_operands = 1 : i64, tpu.core_type = #tpu.core_type<tc>, window_params = [{transform_indices = @transform_0, window_bounds = array<i64: 1, 12, 20>}, {transform_indices = @transform_1, window_bounds = array<i64: 1, 4, 12, 5>}]} {
    %c0 = arith.constant 0 : index
    %c0_0 = arith.constant 0 : index
    %c0_1 = arith.constant 0 : index
    %0 = vector.load %arg2[%c0, %c0_0, %c0_1] : memref<1x12x20xf32, #tpu.memory_space<vmem>>, vector<1x12x10xf32>
    %1 = vector.shape_cast %0 : vector<1x12x10xf32> to vector<12x10xf32>
    %2 = tpu.transpose %1, [1, 0] : vector<12x10xf32> -> vector<10x12xf32>
    %c0_2 = arith.constant 0 : index
    %c0_3 = arith.constant 0 : index
    %3 = vector.load %arg4[%c0_2, %c0_3] : memref<10x12xf32, #tpu.memory_space<vmem>>, vector<10x12xf32>
    tpu.vector_store %arg4[%c0_2, %c0_3], %2 {strides = array<i32>} : memref<10x12xf32, #tpu.memory_space<vmem>>, vector<10x12xf32>,
    %c0_4 = arith.constant 0 : index
    %c0_5 = arith.constant 0 : index
    %4 = tpu.strided_load %arg4[%c0_4, %c0_5] {strides = array<i32: 2, 1>} : memref<10x12xf32, #tpu.memory_space<vmem>>, vector<5x12xf32>
    %5 = tpu.transpose %4, [1, 0] : vector<5x12xf32> -> vector<12x5xf32>
    %c0_6 = arith.constant 0 : index
    %c0_7 = arith.constant 0 : index
    %c0_8 = arith.constant 0 : index
    %c0_9 = arith.constant 0 : index
    %6 = vector.load %arg3[%c0_6, %c0_7, %c0_8, %c0_9] : memref<1x4x12x5xf32, #tpu.memory_space<vmem>>, vector<1x1x12x5xf32>
    %7 = vector.shape_cast %6 : vector<1x1x12x5xf32> to vector<12x5xf32>
    %8 = vector.shape_cast %5 : vector<12x5xf32> to vector<1x1x12x5xf32>
    tpu.vector_store %arg3[%c0_6, %c0_7, %c0_8, %c0_9], %8 {strides = array<i32>} : memref<1x4x12x5xf32, #tpu.memory_space<vmem>>, vector<1x1x12x5xf32>,
    %c1 = arith.constant 1 : index
    %c0_10 = arith.constant 0 : index
    %9 = tpu.strided_load %arg4[%c1, %c0_10] {strides = array<i32: 2, 1>} : memref<10x12xf32, #tpu.memory_space<vmem>>, vector<5x12xf32>
    %10 = tpu.transpose %9, [1, 0] : vector<5x12xf32> -> vector<12x5xf32>
    %c0_11 = arith.constant 0 : index
    %c1_12 = arith.constant 1 : index
    %c0_13 = arith.constant 0 : index
    %c0_14 = arith.constant 0 : index
    %11 = vector.load %arg3[%c0_11, %c1_12, %c0_13, %c0_14] : memref<1x4x12x5xf32, #tpu.memory_space<vmem>>, vector<1x1x12x5xf32>
    %12 = vector.shape_cast %11 : vector<1x1x12x5xf32> to vector<12x5xf32>
    %13 = vector.shape_cast %10 : vector<12x5xf32> to vector<1x1x12x5xf32>
    tpu.vector_store %arg3[%c0_11, %c1_12, %c0_13, %c0_14], %13 {strides = array<i32>} : memref<1x4x12x5xf32, #tpu.memory_space<vmem>>, vector<1x1x12x5xf32>,
    %c0_15 = arith.constant 0 : index
    %c0_16 = arith.constant 0 : index
    %c10 = arith.constant 10 : index
    %14 = vector.load %arg2[%c0_15, %c0_16, %c10] : memref<1x12x20xf32, #tpu.memory_space<vmem>>, vector<1x12x10xf32>
    %15 = vector.shape_cast %14 : vector<1x12x10xf32> to vector<12x10xf32>
    %16 = tpu.transpose %15, [1, 0] : vector<12x10xf32> -> vector<10x12xf32>
    %c0_17 = arith.constant 0 : index
    %c0_18 = arith.constant 0 : index
    %17 = vector.load %arg4[%c0_17, %c0_18] : memref<10x12xf32, #tpu.memory_space<vmem>>, vector<10x12xf32>
    tpu.vector_store %arg4[%c0_17, %c0_18], %16 {strides = array<i32>} : memref<10x12xf32, #tpu.memory_space<vmem>>, vector<10x12xf32>,
    %c0_19 = arith.constant 0 : index
    %c0_20 = arith.constant 0 : index
    %18 = tpu.strided_load %arg4[%c0_19, %c0_20] {strides = array<i32: 2, 1>} : memref<10x12xf32, #tpu.memory_space<vmem>>, vector<5x12xf32>
    %19 = tpu.transpose %18, [1, 0] : vector<5x12xf32> -> vector<12x5xf32>
    %c0_21 = arith.constant 0 : index
    %c2 = arith.constant 2 : index
    %c0_22 = arith.constant 0 : index
    %c0_23 = arith.constant 0 : index
    %20 = vector.load %arg3[%c0_21, %c2, %c0_22, %c0_23] : memref<1x4x12x5xf32, #tpu.memory_space<vmem>>, vector<1x1x12x5xf32>
    %21 = vector.shape_cast %20 : vector<1x1x12x5xf32> to vector<12x5xf32>
    %22 = vector.shape_cast %19 : vector<12x5xf32> to vector<1x1x12x5xf32>
    tpu.vector_store %arg3[%c0_21, %c2, %c0_22, %c0_23], %22 {strides = array<i32>} : memref<1x4x12x5xf32, #tpu.memory_space<vmem>>, vector<1x1x12x5xf32>,
    %c1_24 = arith.constant 1 : index
    %c0_25 = arith.constant 0 : index
    %23 = tpu.strided_load %arg4[%c1_24, %c0_25] {strides = array<i32: 2, 1>} : memref<10x12xf32, #tpu.memory_space<vmem>>, vector<5x12xf32>
    %24 = tpu.transpose %23, [1, 0] : vector<5x12xf32> -> vector<12x5xf32>
    %c0_26 = arith.constant 0 : index
    %c3 = arith.constant 3 : index
    %c0_27 = arith.constant 0 : index
    %c0_28 = arith.constant 0 : index
    %25 = vector.load %arg3[%c0_26, %c3, %c0_27, %c0_28] : memref<1x4x12x5xf32, #tpu.memory_space<vmem>>, vector<1x1x12x5xf32>
    %26 = vector.shape_cast %25 : vector<1x1x12x5xf32> to vector<12x5xf32>
    %27 = vector.shape_cast %24 : vector<12x5xf32> to vector<1x1x12x5xf32>
    tpu.vector_store %arg3[%c0_26, %c3, %c0_27, %c0_28], %27 {strides = array<i32>} : memref<1x4x12x5xf32, #tpu.memory_space<vmem>>, vector<1x1x12x5xf32>,
    return
  }
  func.func @transform_0(%arg0: i32, %arg1: i32) -> (i32, i32, i32) {
    %c0_i32 = arith.constant 0 : i32
    %c0_i32_0 = arith.constant 0 : i32
    return %arg0, %arg1, %c0_i32 : i32, i32, i32
  }
  func.func @transform_1(%arg0: i32, %arg1: i32) -> (i32, i32, i32, i32) {
    %c0_i32 = arith.constant 0 : i32
    %c0_i32_0 = arith.constant 0 : i32
    %c0_i32_1 = arith.constant 0 : i32
    return %arg0, %c0_i32, %arg1, %c0_i32_0 : i32, i32, i32, i32
  }
}

module attributes {stable_mosaic.version = 11 : i64} {
  func.func @_down_block_kernel_nhwc(%arg0: i32, %arg1: i32, %arg2: memref<1x8x2x8x8xf32, #tpu.memory_space<vmem>>, %arg3: memref<1x8x8x16xf32, #tpu.memory_space<vmem>>) attributes {dimension_semantics = [#tpu.dimension_semantics<parallel>, #tpu.dimension_semantics<parallel>], iteration_bounds = array<i64: 2, 1>, scalar_prefetch = 0 : i64, scratch_operands = 0 : i64, tpu.core_type = #tpu.core_type<tc>, window_params = [{transform_indices = @transform_0, window_bounds = array<i64: 1, 8, 2, 8, 8>}, {transform_indices = @transform_1, window_bounds = array<i64: 1, 8, 8, 16>}]} {
    %c0 = arith.constant 0 : index
    %c0_0 = arith.constant 0 : index
    %c0_1 = arith.constant 0 : index
    %c0_2 = arith.constant 0 : index
    %c0_3 = arith.constant 0 : index
    %0 = vector.load %arg2[%c0, %c0_0, %c0_1, %c0_2, %c0_3] : memref<1x8x2x8x8xf32, #tpu.memory_space<vmem>>, vector<1x8x1x8x8xf32>
    %1 = vector.shape_cast %0 : vector<1x8x1x8x8xf32> to vector<8x8x8xf32>
    %c0_4 = arith.constant 0 : index
    %c0_5 = arith.constant 0 : index
    %c0_6 = arith.constant 0 : index
    %c0_7 = arith.constant 0 : index
    %2 = vector.load %arg3[%c0_4, %c0_5, %c0_6, %c0_7] : memref<1x8x8x16xf32, #tpu.memory_space<vmem>>, vector<1x8x8x8xf32>
    %3 = vector.shape_cast %2 : vector<1x8x8x8xf32> to vector<8x8x8xf32>
    %4 = vector.shape_cast %1 : vector<8x8x8xf32> to vector<1x8x8x8xf32>
    tpu.vector_store %arg3[%c0_4, %c0_5, %c0_6, %c0_7], %4 {strides = array<i32>} : memref<1x8x8x16xf32, #tpu.memory_space<vmem>>, vector<1x8x8x8xf32>,
    %c0_8 = arith.constant 0 : index
    %c0_9 = arith.constant 0 : index
    %c1 = arith.constant 1 : index
    %c0_10 = arith.constant 0 : index
    %c0_11 = arith.constant 0 : index
    %5 = vector.load %arg2[%c0_8, %c0_9, %c1, %c0_10, %c0_11] : memref<1x8x2x8x8xf32, #tpu.memory_space<vmem>>, vector<1x8x1x8x8xf32>
    %6 = vector.shape_cast %5 : vector<1x8x1x8x8xf32> to vector<8x8x8xf32>
    %c0_12 = arith.constant 0 : index
    %c0_13 = arith.constant 0 : index
    %c0_14 = arith.constant 0 : index
    %c8 = arith.constant 8 : index
    %7 = vector.load %arg3[%c0_12, %c0_13, %c0_14, %c8] : memref<1x8x8x16xf32, #tpu.memory_space<vmem>>, vector<1x8x8x8xf32>
    %8 = vector.shape_cast %7 : vector<1x8x8x8xf32> to vector<8x8x8xf32>
    %9 = vector.shape_cast %6 : vector<8x8x8xf32> to vector<1x8x8x8xf32>
    tpu.vector_store %arg3[%c0_12, %c0_13, %c0_14, %c8], %9 {strides = array<i32>} : memref<1x8x8x16xf32, #tpu.memory_space<vmem>>, vector<1x8x8x8xf32>,
    return
  }
  func.func @transform_0(%arg0: i32, %arg1: i32) -> (i32, i32, i32, i32, i32) {
    %c0_i32 = arith.constant 0 : i32
    %c0_i32_0 = arith.constant 0 : i32
    %c0_i32_1 = arith.constant 0 : i32
    %c0_i32_2 = arith.constant 0 : i32
    return %arg0, %arg1, %c0_i32, %c0_i32_0, %c0_i32_1 : i32, i32, i32, i32, i32
  }
  func.func @transform_1(%arg0: i32, %arg1: i32) -> (i32, i32, i32, i32) {
    %c0_i32 = arith.constant 0 : i32
    %c0_i32_0 = arith.constant 0 : i32
    %c0_i32_1 = arith.constant 0 : i32
    return %arg0, %arg1, %c0_i32, %c0_i32_0 : i32, i32, i32, i32
  }
}

</mosaic_0001>

<bundles_post_ra>
// kernel: _down_block_fast.1
= control target key start
LH: loop header
LB: loop body
LE: loop exit
PB: predicated region body
PF: predicated region fallthrough
CT: control target
= control target key end

     0   :  { %s551_s6 = smov 0   ;;  %s553_s7 = smov 0   ;;  %s588_s0 = inlined_call_operand.vmem [shape: f32[2,12,20], index: 0, kind: input, shape index: {}]   ;;  %s589_s1 = inlined_call_operand.vmem [shape: f32[2,4,12,5], index: 1, kind: output, shape index: {}]  }
   0x1   :  { %s555_s8 = smov 0  }
   0x2 LB: > { %s23_s9 = sadd.s32 1, %s534_s7  ;;  %p475_p0 = scmp.ge.s32.totalorder %s538_s8, 1  ;;  %s538_s8 = sphi %s555_s8, %s11_s8   ;;  %s534_s7 = sphi %s553_s7, %s591_s7   ;;  %s530_s6 = sphi %s551_s6, %s590_s6  }
   0x3   : > { %p25_p1 = scmp.ge.s32.totalorder %s23_s9, 2  ;;  %p108_p2 = scmp.lt.s32.totalorder %s538_s8, 3 }
   0x5   : > { %s593_s9 = smov (%p25_p1, %s23_s9), 0  ;;  %p109_p3 = pnand %p475_p0, %p108_p2 }
   0x6   : > { %p137_p4 = scmp.lt.s32.totalorder (!%p109_p3), %s530_s6, 1  ;;  %s540_s14 = smov (!%p109_p3), 118  }
   0x7   : > { %112 = sbr.rel (%p109_p3) target bundleno = 406 (0x196), region = 24 }
   0xc   : > { %s595_s6 = smov (!%p137_p4, %s530_s6), 1  ;;  %vm190_vm0 = vcmask 97280   ;;  %vm192_vm1 = vcmask 91136   ;;  %vm227_vm2 = vcmask 39936   ;;  %vm229_vm3 = vcmask 35840  }
   0xd   : > { %s488_s10 = sshll.u32 %s595_s6, 4  ;;  %s489_s15 = sshll.u32 %s595_s6, 6 }
   0xe   : > { %s144_s13 = scalar_lea.vmem %s588_s0, %s488_s10  ;;  %s154_s18 = scalar_lea.vmem %s589_s1, %s489_s15 }
   0xf   : > { %v268_v0 = vld [vmem:[%s144_s13] sm:$0xff]  ;;  %v269_v1 = vld [vmem:[%s144_s13 + $0x8] sm:$0xf] }
  0x10   : > { %272 = vrot.lane.b32.xlu0 %v268_v0, %s540_s14  ;;  %158 = vxpose.xlu1.b32.start [1/2] (short) (narrow) %v268_v0, 16  ;;  %v157_v2 = vld [vmem:[%s144_s13 + $0x8] sm:$0xf] }
  0x14   : > { %274 = vrot.lane.b32.xlu0 %v269_v1, %s540_s14  ;;  %159 = vxpose.xlu1.b32.end [2/2] (short) (narrow) %v157_v2, 16 }
  0x82   : > { %v273_v3 = vpop.permute.xlu0 %272 }
  0x83   : > { %278 = vxpose.xlu0.b32.start [1/2] (short) (narrow) %v273_v3, 16 }
  0x86   : > { %v275_v4 = vpop.permute.xlu0 %274 }
  0x87   : > { %279 = vxpose.xlu0.b32.end [2/2] (short) (narrow) %v275_v4, 16 }
  0x8c   : > { %v174_v5 = vpop.trf.xlu1 }
  0x8d   : > { %191 = vst.msk [vmem:[#allocation2] sm:$0xff] %vm190_vm0, %v174_v5 }
  0x90   : > { %v175_v6 = vpop.trf.xlu1 }
  0x91   : > { %193 = vst.msk [vmem:[#allocation2 + $0x8] sm:$0x3] %vm192_vm1, %v175_v6 }
  0x98   : > { %v194_v7 = vld [vmem:[#allocation2] ss:$2 sm:$0x1f]  ;;  %v232_v8 = vld [vmem:[#allocation2 + $0x1] ss:$2 sm:$0x1f] }
  0x99   : > { %195 = vxpose.xlu1.b32.start.end [1/1] (short) (narrow) %v194_v7, 16 }
  0x9e   : > { %233 = vxpose.xlu1.b32.start.end [1/1] (short) (narrow) %v232_v8, 16 }
  0xff   : > { %v294_v9 = vpop.trf.xlu0 }
 0x100   : > { %310 = vst.msk [vmem:[#allocation2] sm:$0xff] %vm190_vm0, %v294_v9 }
 0x103   : > { %v295_v10 = vpop.trf.xlu0 }
 0x104   : > { %311 = vst.msk [vmem:[#allocation2 + $0x8] sm:$0x3] %vm192_vm1, %v295_v10 }
 0x10b   : > { %v312_v11 = vld [vmem:[#allocation2] ss:$2 sm:$0x1f]  ;;  %v348_v12 = vld [vmem:[#allocation2 + $0x1] ss:$2 sm:$0x1f] }
 0x10c   : > { %313 = vxpose.xlu1.b32.start.end [1/1] (short) (narrow) %v312_v11, 16 }
 0x111   : > { %349 = vxpose.xlu1.b32.start.end [1/1] (short) (narrow) %v348_v12, 16 }
 0x115   : > { %v211_v13 = vpop.trf.xlu1 }
 0x116   : > { %228 = vst.msk [vmem:[%s154_s18] sm:$0xff] %vm227_vm2, %v211_v13 }
 0x119   : > { %v212_v14 = vpop.trf.xlu1 }
 0x11a   : > { %230 = vst.msk [vmem:[%s154_s18 + $0x8] sm:$0xf] %vm229_vm3, %v212_v14 }
 0x11d   : > { %v249_v15 = vpop.trf.xlu1 }
 0x11e   : > { %480 = vst.msk [vmem:[%s154_s18 + $0x10] sm:$0xff] %vm227_vm2, %v249_v15 }
 0x121   : > { %v250_v16 = vpop.trf.xlu1 }
 0x122   : > { %481 = vst.msk [vmem:[%s154_s18 + $0x18] sm:$0xf] %vm229_vm3, %v250_v16 }
 0x188   : > { %v329_v17 = vpop.trf.xlu1 }
 0x189   : > { %482 = vst.msk [vmem:[%s154_s18 + $0x20] sm:$0xff] %vm227_vm2, %v329_v17 }
 0x18c   : > { %v330_v18 = vpop.trf.xlu1 }
 0x18d   : > { %483 = vst.msk [vmem:[%s154_s18 + $0x28] sm:$0xf] %vm229_vm3, %v330_v18 }
 0x190   : > { %v365_v19 = vpop.trf.xlu1 }
 0x191   : > { %484 = vst.msk [vmem:[%s154_s18 + $0x30] sm:$0xff] %vm227_vm2, %v365_v19 }
 0x194   : > { %v366_v20 = vpop.trf.xlu1 }
 0x195   : > { %485 = vst.msk [vmem:[%s154_s18 + $0x38] sm:$0xf] %vm229_vm3, %v366_v20 }
 0x196 PF: > { %s11_s8 = sadd.s32 1, %s538_s8   ;;  %s590_s6 = smov %s534_s7 }
 0x197   : > { %p8_p5 = scmp.ge.s32.totalorder %s11_s8, 4   ;;  %s591_s7 = smov %s593_s9 }
 0x199   :  { %10 = sbr.rel (!%p8_p5) target bundleno = 2 (0x2), region = 58 }

// kernel: _down_block_fallback.1
= control target key start
LH: loop header
LB: loop body
LE: loop exit
PB: predicated region body
PF: predicated region fallthrough
CT: control target
= control target key end

     0   :  { %6 = vsyncpa [#allocation3], 0  ;;  %s665_s0 = inlined_call_operand.vmem [shape: f32[2,8,2,8,8], index: 0, kind: input, shape index: {}]   ;;  %s666_s1 = inlined_call_operand.hbm [shape: f32[2,8,8,16], index: 1, kind: output, shape index: {}]  }
   0x1   :  { %8 = vsyncpa [#allocation3 + $0x1], 0  ;;  %s485_s6 = smov 0   ;;  %s487_s7 = smov 0  }
   0x2   :  { %s489_s8 = smov 0   ;;  %s491_s9 = smov 0  }
   0x3   :  { %s493_s10 = smov 0   ;;  %s495_s11 = smov 0  }
   0x4 LB: > { %s314_s12 = sadd.s32 4294967295, %s470_s11   ;;  %s315_s13 = sadd.s32 4294967294, %s470_s11   ;;  %s470_s11 = sphi %s495_s11, %s14_s11   ;;  %s466_s10 = sphi %s493_s10, %s673_s10   ;;  %s462_s9 = sphi %s491_s9, %s672_s9   ;;  %s458_s8 = sphi %s489_s8, %s671_s8   ;;  %s454_s7 = sphi %s487_s7, %s670_s7   ;;  %s450_s6 = sphi %s485_s6, %s669_s6  }
   0x5   : > { %s26_s14 = sadd.s32 1, %s466_s10  ;;  %s63_s15 = sadd.s32 1, %s458_s8 }
   0x6   : > { %p28_p0 = scmp.ge.s32.totalorder %s26_s14, 2  ;;  %p73_p1 = scmp.ne.s32.totalorder %s458_s8, %s454_s7 }
   0x7   : > { %p74_p2 = scmp.eq.s32.totalorder %s314_s12, 1  ;;  %p79_p3 = scmp.ne.s32.totalorder %s454_s7, %s450_s6 }
   0x8   : > { %s675_s14 = smov (%p28_p0, %s26_s14), 0  ;;  %p80_p5 = scmp.eq.s32.totalorder %s315_s13, 1 }
   0x9   : > { %p525_p4 = por %p74_p2, %p73_p1  ;;  %s58_s17 = ssub.s32 %s466_s10, %s675_s14 }
   0xa   : > { %p318_p6 = scmp.ge.s32.totalorder %s470_s11, 1  ;;  %p61_p7 = scmp.eq.s32.totalorder %s58_s17, 0 }
   0xb   : > { %p532_p8 = por %p80_p5, %p79_p3  ;;  %p112_p9 = scmp.lt.s32.totalorder %s470_s11, 3 }
   0xc   : > { %s538_s19 = scalar_select %p61_p7, %s458_s8, %s63_s15  }
   0xd   : > { %p113_p10 = pnand %p318_p6, %p112_p9 }
   0xe   : > { %p138_p11 = scmp.lt.s32.totalorder (!%p113_p10), %s462_s9, 1  ;;  %s134_s20 = sand.u32 (!%p113_p10), 1, %s454_s7  }
   0xf   : > { %116 = sbr.rel (%p113_p10) target bundleno = 167 (0xa7), region = 24  ;;  %s319_s23 = sshll.u32 (!%p113_p10), %s134_s20, 6 }
  0x10   : > { %s472_s27 = smov (!%p113_p10), 8   ;;  %s559_s28 = scalar_lea.vmem (!%p113_p10), [#allocation2], %s319_s23 }
  0x11   : > { %s336_s29 = sshll.u32 (!%p113_p10), %s462_s9, 10  ;;  %s232_s30 = sshll.u32 (!%p113_p10), %s559_s28, 4  ;;  %s611_s30 = int_to_ptr.vmem [resolvable:$true] %s232_s30 }
  0x12   : > { %s609_s4 = scalar_lea.hbm (!%p113_p10), %s666_s1, %s336_s29  ;;  %s619_s5 = scalar_lea.sflag (!%p113_p10), [#allocation3], %s134_s20 }
  0x13   : > { %s473_s12 = smov (!%p113_p10), [#allocation2]  }
  0x14   : > { %s139_s21 = scalar_select %p138_p11, %s462_s9, 1  ;;  %vm157_vm0 = vcmask 64512   ;;  %vm207_vm1 = vcmask 130112  }
  0x15   : > { %s394_s9 = scalar_lea.vmem %s611_s30, 1024  ;;  %s398_s13 = sshll.u32 %s473_s12, 4  ;;  %s399_s13 = int_to_ptr.vmem [resolvable:$false] %s398_s13 }
  0x16   : > { %s335_s22 = sshll.u32 %s139_s21, 7  ;;  %p395_p12 = scmp.ne.s32.totalorder %s611_s30, %s394_s9 }
  0x17   : > { %s548_s26 = scalar_lea.vmem %s665_s0, %s335_s22  ;;  %s400_s15 = scalar_lea.vmem %s399_s13, 2048 }
  0x18   : > { %v324_v0 = vld [vmem:[%s548_s26 + $0x28] sm:$0xff]  ;;  %v325_v2 = vld [vmem:[%s548_s26 + $0x38] sm:$0xff]  ;;  %v151_v4 = vld [vmem:[%s548_s26 + $0x20] sm:$0xff]  ;;  %p396_p13 = pnand %p395_p12, %p525_p4  ;;  %p401_p1 = scmp.lt.s32.totalorder %s611_s30, %s399_s13 }
  0x19   : > { %v322_v1 = vld [vmem:[%s548_s26 + $0x8] sm:$0xff]  ;;  %187 = vrot.lane.b32.xlu1 %v324_v0, %s472_s27  ;;  %v323_v3 = vld [vmem:[%s548_s26 + $0x18] sm:$0xff]  ;;  %v149_v5 = vld [vmem:[%s548_s26] sm:$0xff]  ;;  %p402_p2 = scmp.lt.s32.totalorder %s400_s15, %s394_s9 }
  0x1a   : > { %183 = vrot.lane.b32.xlu0 %v322_v1, %s472_s27  ;;  %v152_v6 = vld [vmem:[%s548_s26 + $0x30] sm:$0xff]  ;;  %160 = vst.msk [vmem:[%s559_s28 + $0x10] sm:$0xff] %vm157_vm0, %v151_v4  ;;  %158 = vst.msk [vmem:[%s559_s28] sm:$0xff] %vm157_vm0, %v149_v5  ;;  %p397_p0 = pneg %p396_p13 }
  0x1b   : > { %161 = vst.msk [vmem:[%s559_s28 + $0x18] sm:$0xff] %vm157_vm0, %v152_v6  ;;  %v150_v7 = vld [vmem:[%s548_s26 + $0x10] sm:$0xff]  ;;  %v153_v9 = vld [vmem:[%s548_s26 + $0x40] sm:$0xff]  ;;  %v327_v12 = vld [vmem:[%s548_s26 + $0x58] sm:$0xff]  ;;  %p403_p3 = por %p402_p2, %p401_p1 }
  0x1c   : > { %v154_v8 = vld [vmem:[%s548_s26 + $0x50] sm:$0xff]  ;;  %159 = vst.msk [vmem:[%s559_s28 + $0x8] sm:$0xff] %vm157_vm0, %v150_v7  ;;  %162 = vst.msk [vmem:[%s559_s28 + $0x20] sm:$0xff] %vm157_vm0, %v153_v9  ;;  %v155_v11 = vld [vmem:[%s548_s26 + $0x60] sm:$0xff] }
  0x1d   : > { %189 = vrot.lane.b32.xlu1 %v325_v2, %s472_s27  ;;  %163 = vst.msk [vmem:[%s559_s28 + $0x28] sm:$0xff] %vm157_vm0, %v154_v8  ;;  %v156_v10 = vld [vmem:[%s548_s26 + $0x70] sm:$0xff]  ;;  %v326_v13 = vld [vmem:[%s548_s26 + $0x48] sm:$0xff]  ;;  %p404_p5 = pnand %p403_p3, %p397_p0 }
  0x1e   : > { %185 = vrot.lane.b32.xlu0 %v323_v3, %s472_s27  ;;  %165 = vst.msk [vmem:[%s559_s28 + $0x38] sm:$0xff] %vm157_vm0, %v156_v10  ;;  %164 = vst.msk [vmem:[%s559_s28 + $0x30] sm:$0xff] %vm157_vm0, %v155_v11  ;;  %v329_v14 = vld [vmem:[%s548_s26 + $0x78] sm:$0xff] }
  0x1f   : > { %v328_v15 = vld [vmem:[%s548_s26 + $0x68] sm:$0xff] }
  0x21   : > { %193 = vrot.lane.b32.xlu1 %v327_v12, %s472_s27 }
  0x22   : > { %191 = vrot.lane.b32.xlu0 %v326_v13, %s472_s27 }
  0x25   : > { %197 = vrot.lane.b32.xlu1 %v329_v14, %s472_s27 }
  0x26   : > { %195 = vrot.lane.b32.xlu0 %v328_v15, %s472_s27 }
  0x8b   : > { %v188_v16 = vpop.permute.xlu1 %187 }
  0x8c   : > { %v184_v17 = vpop.permute.xlu0 %183  ;;  %210 = vst.msk [vmem:[%s559_s28 + $0x10] sm:$0xff] %vm207_vm1, %v188_v16 }
  0x8d   : > { %208 = vst.msk [vmem:[%s559_s28] sm:$0xff] %vm207_vm1, %v184_v17 }
  0x8f   : > { %v190_v18 = vpop.permute.xlu1 %189 }
  0x90   : > { %v186_v19 = vpop.permute.xlu0 %185  ;;  %211 = vst.msk [vmem:[%s559_s28 + $0x18] sm:$0xff] %vm207_vm1, %v190_v18 }
  0x91   : > { %209 = vst.msk [vmem:[%s559_s28 + $0x8] sm:$0xff] %vm207_vm1, %v186_v19 }
  0x93   : > { %v194_v20 = vpop.permute.xlu1 %193 }
  0x94   : > { %v192_v21 = vpop.permute.xlu0 %191  ;;  %213 = vst.msk [vmem:[%s559_s28 + $0x28] sm:$0xff] %vm207_vm1, %v194_v20 }
  0x95   : > { %212 = vst.msk [vmem:[%s559_s28 + $0x20] sm:$0xff] %vm207_vm1, %v192_v21 }
  0x97   : > { %v198_v22 = vpop.permute.xlu1 %197 }
  0x98   : > { %v196_v23 = vpop.permute.xlu0 %195  ;;  %215 = vst.msk [vmem:[%s559_s28 + $0x38] sm:$0xff] %vm207_vm1, %v198_v22 }
  0x99   : > { %214 = vst.msk [vmem:[%s559_s28 + $0x30] sm:$0xff] %vm207_vm1, %v196_v23 }
  0x9a   : > { %407 = shalt.err (!%p404_p5)
}
  0x9b   : > { %s408_s17 = scalar_lea.hbm %s609_s4, 1024  ;;  %s412_s22 = scalar_lea.hbm %s666_s1, 2048 }
  0x9c   : > { %p409_p6 = scmp.ne.s32.totalorder %s609_s4, %s408_s17  ;;  %p413_p10 = scmp.lt.s32.totalorder %s609_s4, %s666_s1 }
  0x9d   : > { %p414_p11 = scmp.lt.s32.totalorder %s412_s22, %s408_s17 }
  0x9e   : > { %p410_p7 = pnand %p409_p6, %p525_p4 }
  0x9f   : > { %p415_p12 = por %p414_p11, %p413_p10 }
  0xa0   : > { %p411_p9 = pneg %p410_p7 }
  0xa2   : > { %p416_p13 = pnand %p415_p12, %p411_p9 }
  0xa4   : > { %419 = shalt.err (!%p416_p13)
}
  0xa5   : > { %s474_s25 = smov 128  }
  0xa6   : > { %337 = dma.vmem_to_hbm [thread:$0]  (%p525_p4), %s611_s30, 1024, %s609_s4, %s619_s5, %s474_s25, %s474_s25, %s472_s27  }
  0xa7 PF: > { %p343_p0 = scmp.ge.s32.totalorder %s470_s11, 2  ;;  %s247_s26 = sand.u32 1, %s450_s6  }
  0xa8   : > { %s248_s28 = scalar_lea.sflag [#allocation3], %s247_s26 }
  0xa9   : > { %p340_p1 = pnand %p343_p0, %p532_p8 }
  0xab   : > { %p341_p2 = pneg %p340_p1 }
  0xad   : > { %445 = dma.done.wait (%p341_p2), %s248_s28, 1024  }
  0xae   : > { %447 = vsyncadd (%p341_p2), %s248_s28, 4294966272  ;;  %s14_s11 = sadd.s32 1, %s470_s11   ;;  %s669_s6 = smov %s454_s7 }
  0xaf   : > { %p11_p3 = scmp.ge.s32.totalorder %s14_s11, 4   ;;  %s670_s7 = smov %s458_s8 }
  0xb0   : > { %s671_s8 = smov %s538_s19  ;;  %s672_s9 = smov %s466_s10 }
  0xb1   : > { %s673_s10 = smov %s675_s14  ;;  %13 = sbr.rel (!%p11_p3) target bundleno = 4 (0x4), region = 60 }
  0xb6   :  { %253 = vsyncpa [#allocation3], 1 }
  0xb7   :  { %255 = vsyncpa [#allocation3 + $0x1], 1 }

</bundles_post_ra>
